<compile_context>
chip_gen: v6e
topology: v6e:2x2x1
jax: 0.10.0
libtpu: 0.0.40
codegen_flags: <defaults>
</compile_context>

<pallas_src>
import functools

import jax
import jax.numpy as jnp
from jax.experimental import pallas as pl
from jax.experimental.pallas import tpu as pltpu

C, H, W = 4, 16, 16
D = C * H * W            # 1024 flattened features
LATENT = 32              # true latent dim of the linear AE
LATENT_PAD = 128         # lane-aligned, zero-padded latent (same math)


def _round_up(x, m):
    return (x + m - 1) // m * m


def _ae_kernel(nb_ref, x_ref, we_ref, be_ref, wd_ref, bd_ref,
               recon_ref, psum_ref, *, tile_b):
    """One batch tile: encode -> decode -> lane-dense |x - recon| partial sum.

    nb_ref:    (1,)                 i32  SMEM   actual batch size (prefetched)
    x_ref:     (tile_b, D)          f32  VMEM   input batch tile
    we_ref:    (D, LATENT_PAD)      bf16 VMEM   encoder weight (resident)
    be_ref:    (1, LATENT_PAD)      f32  VMEM   encoder bias   (resident)
    wd_ref:    (LATENT_PAD, D)      bf16 VMEM   decoder weight (resident)
    bd_ref:    (1, D)               f32  VMEM   decoder bias   (resident)
    recon_ref: (tile_b, D)          bf16 VMEM   reconstruction tile
    psum_ref:  (1, 8, 128)          f32  VMEM   per-tile partial sum of |x - recon|
    """
    x = x_ref[...]                                             # f32

    # encode: z = relu(x @ W_enc + b_enc)   (bf16 MXU, f32 accumulate/epilogue)
    z = jnp.dot(x.astype(jnp.bfloat16), we_ref[...],
                preferred_element_type=jnp.float32) + be_ref[...]
    z = jnp.maximum(z, 0.0)

    # decode: y = sigmoid(z @ W_dec + b_dec)
    # sigmoid via exp (EUP) + approx reciprocal (EUP) -> no VALU divide chain.
    y = jnp.dot(z.astype(jnp.bfloat16), wd_ref[...],
                preferred_element_type=jnp.float32) + bd_ref[...]
    y = pl.reciprocal(1.0 + jnp.exp(-y), approx=True)

    recon_ref[...] = y.astype(recon_ref.dtype)                 # bf16 writeback

    nb = nb_ref[0]
    tile_start = pl.program_id(0) * tile_b
    is_full = tile_start + tile_b <= nb

    def _lane_dense_sum(err):
        # (tile_b, D) f32 -> (1, 8, 128): static lane/sublane-aligned slices +
        # VPU adds only (no XLU scalar reduce, no wide broadcast).
        acc = err[:, 0:128]
        for j in range(1, D // 128):
            acc = acc + err[:, j * 128:(j + 1) * 128]          # (tile_b, 128)
        out = acc[0:8, :]
        for g in range(1, tile_b // 8):
            out = out + acc[g * 8:(g + 1) * 8, :]              # (8, 128)
        return out[None]

    @pl.when(is_full)
    def _():  # fast path: no per-element mask work on full tiles
        psum_ref[...] = _lane_dense_sum(jnp.abs(x - y))

    @pl.when(jnp.logical_not(is_full))
    def _():  # last partial tile: mask out padded batch rows
        row = (jax.lax.broadcasted_iota(jnp.int32, (tile_b, 1), 0) + tile_start)
        err = jnp.where(row < nb, jnp.abs(x - y), 0.0)
        psum_ref[...] = _lane_dense_sum(err)


def prepare_params(w_enc, b_enc, w_dec, b_dec):
    """Pad/cast weights once (hoisted out of the per-call forward path).

    Weights go to bf16 (half the DMA bytes, full MXU rate); LATENT is padded to
    a full 128-lane dim with zeros so the math is exact.
    """
    we = jnp.zeros((D, LATENT_PAD), jnp.bfloat16).at[:, :LATENT].set(
        w_enc.astype(jnp.bfloat16))
    wd = jnp.zeros((LATENT_PAD, D), jnp.bfloat16).at[:LATENT, :].set(
        w_dec.astype(jnp.bfloat16))
    be = jnp.zeros((1, LATENT_PAD), jnp.float32).at[0, :LATENT].set(
        b_enc.astype(jnp.float32))
    bd = b_dec.reshape(1, D).astype(jnp.float32)
    return we, be, wd, bd


def autoencoder_forward(x_nchw, prepared, *, block_b=256, core_parallel=None):
    """Runs the Pallas autoencoder. Returns (x_recon NCHW bf16, mean abs error)."""
    we, be, wd, bd = prepared
    b = x_nchw.shape[0]
    assert x_nchw.shape[1:] == (C, H, W)

    kind = jax.devices()[0].device_kind.lower()
    on_v7 = ("v7" in kind) or ("7x" in kind)

    # Batch tiling. 256 rows fills the 256x256 MXU and amortizes grid-step
    # overhead; small batches collapse to one padded tile. On v7x keep at
    # least two (16-row-aligned) tiles so both TensorCores get work.
    tile_b = min(block_b, _round_up(b, 8))
    if on_v7 and _round_up(b, 8) > 16:
        tile_b = min(tile_b, _round_up((b + 1) // 2, 16))
    b_pad = _round_up(b, tile_b)
    n_tiles = b_pad // tile_b

    if core_parallel is None:
        core_parallel = on_v7 and n_tiles >= 2 and n_tiles % 2 == 0
    dim_sem = (pltpu.CORE_PARALLEL,) if core_parallel else (pltpu.PARALLEL,)

    x_flat = x_nchw.reshape(b, D).astype(jnp.float32)
    if b_pad != b:
        x_flat = jnp.pad(x_flat, ((0, b_pad - b), (0, 0)))

    nb = jnp.asarray([b], jnp.int32)   # runtime scalar -> no recompile per batch size

    kernel = functools.partial(_ae_kernel, tile_b=tile_b)

    flops = 4 * b_pad * D * LATENT_PAD                    # two matmuls
    bytes_accessed = (b_pad * D * 4                       # x in (f32)
                      + b_pad * D * 2                     # recon out (bf16)
                      + 2 * D * LATENT_PAD * 2            # bf16 weights
                      + (LATENT_PAD + D) * 4              # biases
                      + n_tiles * 8 * 128 * 4)            # partial sums

    # VMEM budget from the actual (double-buffered) tile footprint + slack —
    # no artificial 16/48 MiB clamps, honest against v7x's 64 MiB VMEM.
    vmem_bytes = int(
        2 * tile_b * D * 4                 # x tiles (f32, 2 bufs)
        + 2 * tile_b * D * 2               # recon tiles (bf16, 2 bufs)
        + 2 * 2 * D * LATENT_PAD * 2       # W_enc + W_dec (bf16, 2 bufs each)
        + 2 * 8 * LATENT_PAD * 4           # b_enc (sublane padded, 2 bufs)
        + 2 * 8 * D * 4                    # b_dec (sublane padded, 2 bufs)
        + 2 * 8 * 128 * 4                  # psum tiles
        + 6 * 1024 * 1024)                 # slack for compiler scratch

    recon_pad, psum = pl.pallas_call(
        kernel,
        out_shape=(
            jax.ShapeDtypeStruct((b_pad, D), jnp.bfloat16),
            jax.ShapeDtypeStruct((n_tiles, 8, 128), jnp.float32),
        ),
        grid_spec=pltpu.PrefetchScalarGridSpec(
            num_scalar_prefetch=1,
            grid=(n_tiles,),
            in_specs=[
                pl.BlockSpec((tile_b, D), lambda i, nb: (i, 0)),       # x tile
                pl.BlockSpec((D, LATENT_PAD), lambda i, nb: (0, 0)),   # W_enc (resident)
                pl.BlockSpec((1, LATENT_PAD), lambda i, nb: (0, 0)),   # b_enc (resident)
                pl.BlockSpec((LATENT_PAD, D), lambda i, nb: (0, 0)),   # W_dec (resident)
                pl.BlockSpec((1, D), lambda i, nb: (0, 0)),            # b_dec (resident)
            ],
            out_specs=(
                pl.BlockSpec((tile_b, D), lambda i, nb: (i, 0)),       # recon tile
                pl.BlockSpec((1, 8, 128), lambda i, nb: (i, 0, 0)),    # |err| partials
            ),
        ),
        compiler_params=pltpu.CompilerParams(
            dimension_semantics=dim_sem,
            vmem_limit_bytes=vmem_bytes,
        ),
        cost_estimate=pl.CostEstimate(
            flops=flops,
            transcendentals=2 * b_pad * D,     # exp + reciprocal
            bytes_accessed=bytes_accessed,
        ),
    )(nb, x_flat, we, be, wd, bd)

    recon = recon_pad[:b].reshape(b, C, H, W)
    err = jnp.sum(psum) / (b * D)
    return recon, err


def _reference(x_nchw, w_enc, b_enc, w_dec, b_dec):
    """Pure-JAX (f32) reference of the same forward pass."""
    b = x_nchw.shape[0]
    xf = x_nchw.reshape(b, D).astype(jnp.float32)
    z = jnp.maximum(xf @ w_enc + b_enc, 0.0)
    y = jax.nn.sigmoid(z @ w_dec + b_dec)
    err = jnp.mean(jnp.abs(xf - y))
    return y.reshape(b, C, H, W), err


if __name__ == "__main__":
    key = jax.random.PRNGKey(0)
    kx, ke, kbe, kd, kbd, kx2 = jax.random.split(key, 6)

    w_enc = 0.02 * jax.random.normal(ke, (D, LATENT), dtype=jnp.float32)
    b_enc = 0.01 * jax.random.normal(kbe, (LATENT,), dtype=jnp.float32)
    w_dec = 0.02 * jax.random.normal(kd, (LATENT, D), dtype=jnp.float32)
    b_dec = 0.01 * jax.random.normal(kbd, (D,), dtype=jnp.float32)

    # Padded bf16 weights built once, reused for every forward call.
    params = prepare_params(w_enc, b_enc, w_dec, b_dec)

    # Small shape consistent with the module interface: (B, C, H, W) = (2, 4, 16, 16).
    x_small = jax.random.uniform(kx, (2, C, H, W), dtype=jnp.float32)
    recon, err = autoencoder_forward(x_small, params)
    jax.block_until_ready((recon, err))

    recon_ref, err_ref = _reference(x_small, w_enc, b_enc, w_dec, b_dec)
    assert recon.shape == (2, C, H, W)
    # bf16 weights on the MXU + bf16 recon writeback -> loosened tolerances.
    assert jnp.allclose(recon.astype(jnp.float32), recon_ref, atol=2e-2, rtol=2e-2)
    assert jnp.allclose(err, err_ref, atol=2e-3, rtol=2e-2)

    # Larger, non-multiple-of-tile batch exercises the grid axis, resident
    # weights, the unmasked fast path, and the padded-row masking.
    x_big = jax.random.uniform(kx2, (300, C, H, W), dtype=jnp.float32)
    recon_b, err_b = autoencoder_forward(x_big, params)
    jax.block_until_ready((recon_b, err_b))
    recon_b_ref, err_b_ref = _reference(x_big, w_enc, b_enc, w_dec, b_dec)
    assert recon_b.shape == (300, C, H, W)
    assert jnp.allclose(recon_b.astype(jnp.float32), recon_b_ref, atol=2e-2, rtol=2e-2)
    assert jnp.allclose(err_b, err_b_ref, atol=2e-3, rtol=2e-2)

    # TODO(synk): save()/load() (disk I/O of model.pt / config.yaml) intentionally not ported.
    print("KERNEL_OK")
</pallas_src>

<mosaic_0001>
module attributes {stable_mosaic.version = 11 : i64} {
  func.func @_ae_kernel(%arg0: i32, %arg1: memref<1xi32, #tpu.memory_space<smem>>, %arg2: memref<8x1024xf32, #tpu.memory_space<vmem>>, %arg3: memref<1024x128xbf16, #tpu.memory_space<vmem>>, %arg4: memref<1x128xf32, #tpu.memory_space<vmem>>, %arg5: memref<128x1024xbf16, #tpu.memory_space<vmem>>, %arg6: memref<1x1024xf32, #tpu.memory_space<vmem>>, %arg7: memref<8x1024xbf16, #tpu.memory_space<vmem>>, %arg8: memref<1x8x128xf32, #tpu.memory_space<vmem>>) attributes {dimension_semantics = [#tpu.dimension_semantics<parallel>], iteration_bounds = array<i64: 1>, scalar_prefetch = 1 : i64, scratch_operands = 0 : i64, tpu.core_type = #tpu.core_type<tc>, window_params = [{transform_indices = @transform_0, window_bounds = array<i64: 8, 1024>}, {pipeline_mode = #tpu.pipeline_mode<synchronous>, transform_indices = @transform_1, window_bounds = array<i64: 1024, 128>}, {pipeline_mode = #tpu.pipeline_mode<synchronous>, transform_indices = @transform_2, window_bounds = array<i64: 1, 128>}, {pipeline_mode = #tpu.pipeline_mode<synchronous>, transform_indices = @transform_3, window_bounds = array<i64: 128, 1024>}, {pipeline_mode = #tpu.pipeline_mode<synchronous>, transform_indices = @transform_4, window_bounds = array<i64: 1, 1024>}, {transform_indices = @transform_5, window_bounds = array<i64: 8, 1024>}, {transform_indices = @transform_6, window_bounds = array<i64: 1, 8, 128>}]} {
    %c0 = arith.constant 0 : index
    %c0_0 = arith.constant 0 : index
    %0 = vector.load %arg2[%c0, %c0_0] : memref<8x1024xf32, #tpu.memory_space<vmem>>, vector<8x1024xf32>
    %1 = arith.truncf %0 : vector<8x1024xf32> to vector<8x1024xbf16>
    %c0_1 = arith.constant 0 : index
    %c0_2 = arith.constant 0 : index
    %2 = vector.load %arg3[%c0_1, %c0_2] : memref<1024x128xbf16, #tpu.memory_space<vmem>>, vector<1024x128xbf16>
    %cst = arith.constant dense<0.000000e+00> : vector<8x128xf32>
    %3 = tpu.matmul %1, %2, %cst {dimension_numbers = #tpu.dot_dimension_numbers<[1], [0], [0], [1], [0, 0, 1, 1], [], []>} : vector<8x1024xbf16>, vector<1024x128xbf16>, vector<8x128xf32> -> vector<8x128xf32>
    %c0_3 = arith.constant 0 : index
    %c0_4 = arith.constant 0 : index
    %4 = vector.load %arg4[%c0_3, %c0_4] : memref<1x128xf32, #tpu.memory_space<vmem>>, vector<1x128xf32>
    %5 = vector.broadcast %4 : vector<1x128xf32> to vector<8x128xf32>
    %6 = arith.addf %3, %5 : vector<8x128xf32>
    %cst_5 = arith.constant 0.000000e+00 : f32
    %7 = vector.broadcast %cst_5 : f32 to vector<8x128xf32>
    %8 = arith.maximumf %6, %7 : vector<8x128xf32>
    %9 = arith.truncf %8 : vector<8x128xf32> to vector<8x128xbf16>
    %c0_6 = arith.constant 0 : index
    %c0_7 = arith.constant 0 : index
    %10 = vector.load %arg5[%c0_6, %c0_7] : memref<128x1024xbf16, #tpu.memory_space<vmem>>, vector<128x1024xbf16>
    %cst_8 = arith.constant dense<0.000000e+00> : vector<8x1024xf32>
    %11 = tpu.matmul %9, %10, %cst_8 {dimension_numbers = #tpu.dot_dimension_numbers<[1], [0], [0], [1], [0, 0, 1, 1], [], []>} : vector<8x128xbf16>, vector<128x1024xbf16>, vector<8x1024xf32> -> vector<8x1024xf32>
    %c0_9 = arith.constant 0 : index
    %c0_10 = arith.constant 0 : index
    %12 = vector.load %arg6[%c0_9, %c0_10] : memref<1x1024xf32, #tpu.memory_space<vmem>>, vector<1x1024xf32>
    %13 = vector.broadcast %12 : vector<1x1024xf32> to vector<8x1024xf32>
    %14 = arith.addf %11, %13 : vector<8x1024xf32>
    %cst_11 = arith.constant 0.000000e+00 : f32
    %15 = vector.broadcast %cst_11 : f32 to vector<8x1024xf32>
    %16 = arith.subf %15, %14 : vector<8x1024xf32>
    %17 = math.exp %16 : vector<8x1024xf32>
    %cst_12 = arith.constant 1.000000e+00 : f32
    %18 = vector.broadcast %cst_12 : f32 to vector<8x1024xf32>
    %19 = arith.addf %18, %17 : vector<8x1024xf32>
    %20 = tpu.reciprocal %19 {approx = true} : vector<8x1024xf32> -> vector<8x1024xf32>
    %21 = arith.truncf %20 : vector<8x1024xf32> to vector<8x1024xbf16>
    %c0_13 = arith.constant 0 : index
    %c0_14 = arith.constant 0 : index
    %22 = vector.load %arg7[%c0_13, %c0_14] : memref<8x1024xbf16, #tpu.memory_space<vmem>>, vector<8x1024xbf16>
    tpu.vector_store %arg7[%c0_13, %c0_14], %21 {strides = array<i32>} : memref<8x1024xbf16, #tpu.memory_space<vmem>>, vector<8x1024xbf16>,
    %c0_15 = arith.constant 0 : index
    %23 = memref.load %arg1[%c0_15] : memref<1xi32, #tpu.memory_space<smem>>
    %c8_i32 = arith.constant 8 : i32
    %24 = arith.muli %arg0, %c8_i32 : i32
    %c8_i32_16 = arith.constant 8 : i32
    %25 = arith.addi %24, %c8_i32_16 : i32
    %26 = arith.cmpi sle, %25, %23 : i32
    %27 = arith.extui %26 : i1 to i32
    %c0_i32 = arith.constant 0 : i32
    %28 = arith.cmpi ne, %27, %c0_i32 : i32
    scf.if %28 {
      %32 = arith.subf %0, %20 : vector<8x1024xf32>
      %33 = math.absf %32 : vector<8x1024xf32>
      %34 = vector.extract_strided_slice %33 {offsets = [0, 0], sizes = [8, 128], strides = [1, 1]} : vector<8x1024xf32> to vector<8x128xf32>
      %35 = vector.extract_strided_slice %33 {offsets = [0, 128], sizes = [8, 128], strides = [1, 1]} : vector<8x1024xf32> to vector<8x128xf32>
      %36 = arith.addf %34, %35 : vector<8x128xf32>
      %37 = vector.extract_strided_slice %33 {offsets = [0, 256], sizes = [8, 128], strides = [1, 1]} : vector<8x1024xf32> to vector<8x128xf32>
      %38 = arith.addf %36, %37 : vector<8x128xf32>
      %39 = vector.extract_strided_slice %33 {offsets = [0, 384], sizes = [8, 128], strides = [1, 1]} : vector<8x1024xf32> to vector<8x128xf32>
      %40 = arith.addf %38, %39 : vector<8x128xf32>
      %41 = vector.extract_strided_slice %33 {offsets = [0, 512], sizes = [8, 128], strides = [1, 1]} : vector<8x1024xf32> to vector<8x128xf32>
      %42 = arith.addf %40, %41 : vector<8x128xf32>
      %43 = vector.extract_strided_slice %33 {offsets = [0, 640], sizes = [8, 128], strides = [1, 1]} : vector<8x1024xf32> to vector<8x128xf32>
      %44 = arith.addf %42, %43 : vector<8x128xf32>
      %45 = vector.extract_strided_slice %33 {offsets = [0, 768], sizes = [8, 128], strides = [1, 1]} : vector<8x1024xf32> to vector<8x128xf32>
      %46 = arith.addf %44, %45 : vector<8x128xf32>
      %47 = vector.extract_strided_slice %33 {offsets = [0, 896], sizes = [8, 128], strides = [1, 1]} : vector<8x1024xf32> to vector<8x128xf32>
      %48 = arith.addf %46, %47 : vector<8x128xf32>
      %49 = vector.shape_cast %48 : vector<8x128xf32> to vector<1x8x128xf32>
      %c0_18 = arith.constant 0 : index
      %c0_19 = arith.constant 0 : index
      %c0_20 = arith.constant 0 : index
      %50 = vector.load %arg8[%c0_18, %c0_19, %c0_20] : memref<1x8x128xf32, #tpu.memory_space<vmem>>, vector<1x8x128xf32>
      tpu.vector_store %arg8[%c0_18, %c0_19, %c0_20], %49 {strides = array<i32>} : memref<1x8x128xf32, #tpu.memory_space<vmem>>, vector<1x8x128xf32>,
    } else {
    }
    %true = arith.constant true
    %29 = arith.xori %26, %true : i1
    %30 = arith.extui %29 : i1 to i32
    %c0_i32_17 = arith.constant 0 : i32
    %31 = arith.cmpi ne, %30, %c0_i32_17 : i32
    scf.if %31 {
      %32 = tpu.iota {dimensions = array<i32: 0>} : vector<8x1xi32>
      %33 = vector.broadcast %24 : i32 to vector<8x1xi32>
      %34 = arith.addi %32, %33 : vector<8x1xi32>
      %35 = vector.broadcast %23 : i32 to vector<8x1xi32>
      %36 = arith.cmpi slt, %34, %35 : vector<8x1xi32>
      %37 = arith.subf %0, %20 : vector<8x1024xf32>
      %38 = math.absf %37 : vector<8x1024xf32>
      %cst_18 = arith.constant 0.000000e+00 : f32
      %39 = vector.shape_cast %36 : vector<8x1xi1> to vector<8x1xi1>
      %40 = vector.broadcast %39 : vector<8x1xi1> to vector<8x1024xi1>
      %41 = vector.broadcast %cst_18 : f32 to vector<8x1024xf32>
      %42 = arith.select %40, %38, %41 : vector<8x1024xi1>, vector<8x1024xf32>
      %43 = vector.extract_strided_slice %42 {offsets = [0, 0], sizes = [8, 128], strides = [1, 1]} : vector<8x1024xf32> to vector<8x128xf32>
      %44 = vector.extract_strided_slice %42 {offsets = [0, 128], sizes = [8, 128], strides = [1, 1]} : vector<8x1024xf32> to vector<8x128xf32>
      %45 = arith.addf %43, %44 : vector<8x128xf32>
      %46 = vector.extract_strided_slice %42 {offsets = [0, 256], sizes = [8, 128], strides = [1, 1]} : vector<8x1024xf32> to vector<8x128xf32>
      %47 = arith.addf %45, %46 : vector<8x128xf32>
      %48 = vector.extract_strided_slice %42 {offsets = [0, 384], sizes = [8, 128], strides = [1, 1]} : vector<8x1024xf32> to vector<8x128xf32>
      %49 = arith.addf %47, %48 : vector<8x128xf32>
      %50 = vector.extract_strided_slice %42 {offsets = [0, 512], sizes = [8, 128], strides = [1, 1]} : vector<8x1024xf32> to vector<8x128xf32>
      %51 = arith.addf %49, %50 : vector<8x128xf32>
      %52 = vector.extract_strided_slice %42 {offsets = [0, 640], sizes = [8, 128], strides = [1, 1]} : vector<8x1024xf32> to vector<8x128xf32>
      %53 = arith.addf %51, %52 : vector<8x128xf32>
      %54 = vector.extract_strided_slice %42 {offsets = [0, 768], sizes = [8, 128], strides = [1, 1]} : vector<8x1024xf32> to vector<8x128xf32>
      %55 = arith.addf %53, %54 : vector<8x128xf32>
      %56 = vector.extract_strided_slice %42 {offsets = [0, 896], sizes = [8, 128], strides = [1, 1]} : vector<8x1024xf32> to vector<8x128xf32>
      %57 = arith.addf %55, %56 : vector<8x128xf32>
      %58 = vector.shape_cast %57 : vector<8x128xf32> to vector<1x8x128xf32>
      %c0_19 = arith.constant 0 : index
      %c0_20 = arith.constant 0 : index
      %c0_21 = arith.constant 0 : index
      %59 = vector.load %arg8[%c0_19, %c0_20, %c0_21] : memref<1x8x128xf32, #tpu.memory_space<vmem>>, vector<1x8x128xf32>
      tpu.vector_store %arg8[%c0_19, %c0_20, %c0_21], %58 {strides = array<i32>} : memref<1x8x128xf32, #tpu.memory_space<vmem>>, vector<1x8x128xf32>,
    } else {
    }
    return
  }
  func.func @transform_0(%arg0: i32, %arg1: memref<1xi32, #tpu.memory_space<smem>>) -> (i32, i32) {
    %c0_i32 = arith.constant 0 : i32
    %c0_i32_0 = arith.constant 0 : i32
    return %arg0, %c0_i32 : i32, i32
  }
  func.func @transform_1(%arg0: i32, %arg1: memref<1xi32, #tpu.memory_space<smem>>) -> (i32, i32) {
    %c0_i32 = arith.constant 0 : i32
    %c0_i32_0 = arith.constant 0 : i32
    %c0_i32_1 = arith.constant 0 : i32
    return %c0_i32, %c0_i32_0 : i32, i32
  }
  func.func @transform_2(%arg0: i32, %arg1: memref<1xi32, #tpu.memory_space<smem>>) -> (i32, i32) {
    %c0_i32 = arith.constant 0 : i32
    %c0_i32_0 = arith.constant 0 : i32
    %c0_i32_1 = arith.constant 0 : i32
    return %c0_i32, %c0_i32_0 : i32, i32
  }
  func.func @transform_3(%arg0: i32, %arg1: memref<1xi32, #tpu.memory_space<smem>>) -> (i32, i32) {
    %c0_i32 = arith.constant 0 : i32
    %c0_i32_0 = arith.constant 0 : i32
    %c0_i32_1 = arith.constant 0 : i32
    return %c0_i32, %c0_i32_0 : i32, i32
  }
  func.func @transform_4(%arg0: i32, %arg1: memref<1xi32, #tpu.memory_space<smem>>) -> (i32, i32) {
    %c0_i32 = arith.constant 0 : i32
    %c0_i32_0 = arith.constant 0 : i32
    %c0_i32_1 = arith.constant 0 : i32
    return %c0_i32, %c0_i32_0 : i32, i32
  }
  func.func @transform_5(%arg0: i32, %arg1: memref<1xi32, #tpu.memory_space<smem>>) -> (i32, i32) {
    %c0_i32 = arith.constant 0 : i32
    %c0_i32_0 = arith.constant 0 : i32
    return %arg0, %c0_i32 : i32, i32
  }
  func.func @transform_6(%arg0: i32, %arg1: memref<1xi32, #tpu.memory_space<smem>>) -> (i32, i32, i32) {
    %c0_i32 = arith.constant 0 : i32
    %c0_i32_0 = arith.constant 0 : i32
    %c0_i32_1 = arith.constant 0 : i32
    return %arg0, %c0_i32, %c0_i32_0 : i32, i32, i32
  }
}

</mosaic_0001>

<bundles_post_ra>
// kernel: tpu_custom_call.1
= control target key start
LH: loop header
LB: loop body
LE: loop exit
PB: predicated region body
PF: predicated region fallthrough
CT: control target
= control target key end

     0   :  { %14 = vsyncpa [#allocation5], 0  ;;  %s2162_s0 = inlined_call_operand.<no memory space> [shape: s32[1], index: 0, kind: input, shape index: {}]   ;;  %s2163_s1 = inlined_call_operand.hbm [shape: f32[8,1024], index: 1, kind: input, shape index: {}]   ;;  %s2164_s2 = inlined_call_operand.hbm [shape: bf16[1024,128], index: 2, kind: input, shape index: {}]   ;;  %s2165_s3 = inlined_call_operand.vmem [shape: f32[1,128], index: 3, kind: input, shape index: {}]   ;;  %s2166_s4 = inlined_call_operand.hbm [shape: bf16[128,1024], index: 4, kind: input, shape index: {}]   ;;  %s2167_s5 = inlined_call_operand.vmem [shape: f32[1,1024], index: 5, kind: input, shape index: {}]   ;;  %s2168_s6 = inlined_call_operand.hbm [shape: bf16[8,1024], index: 6, kind: output, shape index: {0}]   ;;  %s2169_s7 = inlined_call_operand.hbm [shape: f32[1,8,128], index: 7, kind: output, shape index: {1}]  }
   0x1   :  { %15 = vsyncpa [#allocation8], 0 }
   0x2   :  { %16 = vsyncpa [#allocation6], 0 }
   0x3   :  { %17 = vsyncpa [#allocation12], 0  ;;  %s1977_s24 = smov [#allocation7]  }
   0x4   :  { %s33_s25 = sshll.u32 %s1977_s24, 4  ;;  %s34_s25 = int_to_ptr.vmem [resolvable:$true] %s33_s25 }
   0x5   :  { %s1877_s26 = scalar_lea.vmem %s34_s25, 8192  ;;  %p1882_p1 = scmp.lt.s32.totalorder %s34_s25, %s34_s25 }
   0x6   :  { %p1878_p0 = scmp.ne.s32.totalorder %s34_s25, %s1877_s26  ;;  %p1883_p2 = scmp.lt.s32.totalorder %s1877_s26, %s1877_s26 }
   0x8   :  { %p1884_p3 = por %p1883_p2, %p1882_p1 }
   0xa   :  { %p1885_p4 = pnand %p1884_p3, %p1878_p0 }
   0xc   :  { %1888 = shalt.err (!%p1885_p4)
}
   0xd   :  { %s1978_s27 = smov 64   ;;  %s1979_s28 = smov 4  }
   0xe   :  { %39 = dma.hbm_to_vmem [thread:$0]  %s2164_s2, 8192, %s34_s25, [#allocation8], %s1978_s27, %s1978_s27, %s1979_s28  }
   0xf   :  { %s1980_s8 = smov [#allocation4]   ;;  %s1981_s10 = smov [#allocation9]  }
  0x10   :  { %s24_s9 = sshll.u32 %s1980_s8, 4  ;;  %s47_s11 = sshll.u32 %s1981_s10, 4  ;;  %s25_s9 = int_to_ptr.vmem [resolvable:$true] %s24_s9  ;;  %s48_s11 = int_to_ptr.vmem [resolvable:$true] %s47_s11 }
  0x11   :  { %s1897_s12 = scalar_lea.vmem %s25_s9, 1024  ;;  %p1902_p6 = scmp.lt.s32.totalorder %s25_s9, %s25_s9 }
  0x12   :  { %p1898_p5 = scmp.ne.s32.totalorder %s25_s9, %s1897_s12  ;;  %p1903_p7 = scmp.lt.s32.totalorder %s1897_s12, %s1897_s12 }
  0x14   :  { %p1904_p8 = por %p1903_p7, %p1902_p6 }
  0x16   :  { %p1905_p9 = pnand %p1904_p8, %p1898_p5 }
  0x18   :  { %1908 = shalt.err (!%p1905_p9)
}
  0x19   :  { %27 = dma.hbm_to_vmem [thread:$0]  %s2163_s1, 1024, %s25_s9, [#allocation5]  }
  0x1a   :  { %s1917_s15 = scalar_lea.vmem %s48_s11, 8192  ;;  %p1922_p11 = scmp.lt.s32.totalorder %s48_s11, %s48_s11 }
  0x1b   :  { %p1918_p10 = scmp.ne.s32.totalorder %s48_s11, %s1917_s15  ;;  %p1923_p12 = scmp.lt.s32.totalorder %s1917_s15, %s1917_s15 }
  0x1d   :  { %p1924_p13 = por %p1923_p12, %p1922_p11 }
  0x1f   :  { %p1925_p0 = pnand %p1924_p13, %p1918_p10 }
  0x21   :  { %1928 = shalt.err (!%p1925_p0)
}
  0x22   :  { %s1982_s2 = smov 512   ;;  %s1983_s16 = smov 32  }
  0x23   :  { %53 = dma.hbm_to_vmem [thread:$0]  %s2166_s4, 8192, %s48_s11, [#allocation8], %s1982_s2, %s1982_s2, %s1983_s16  }
  0x24   :  { %1969 = dma.done.wait [#allocation5], 1024  }
  0x25   :  { %1970 = vsyncadd [#allocation5], 4294966272 }
  0x26   :  { %1971 = dma.done.wait [#allocation8], 16384  }
  0x27   :  { %1972 = vsyncadd [#allocation8], 4294950912  ;;  %v1773_v0 = vld [vmem:[#allocation7 + $0x78] sm:$0xff]   ;;  %v1777_v4 = vld [vmem:[#allocation7 + $0x70] sm:$0xff]   ;;  %p1668_p1 = scmp.lt.s32.totalorder %s2162_s0, 8 }
  0x28   :  { %v1774_v1 = vld [vmem:[#allocation7 + $0xf8] sm:$0xff]   ;;  %1675 = vmatprep.subr.bf16.mxu0 %v1773_v0  ;;  %v1778_v5 = vld [vmem:[#allocation7 + $0xf0] sm:$0xff]   ;;  %v1781_v8 = vld [vmem:[#allocation7 + $0x68] sm:$0xff]  }
  0x29   :  { %v1775_v2 = vld [vmem:[#allocation7 + $0x38] sm:$0xff]   ;;  %1697 = vmatprep.subr.bf16.mxu1 %v1774_v1  ;;  %v1779_v6 = vld [vmem:[#allocation7 + $0x30] sm:$0xff]   ;;  %v1782_v9 = vld [vmem:[#allocation7 + $0xe8] sm:$0xff]  }
  0x2a   :  { %v1776_v3 = vld [vmem:[#allocation7 + $0xb8] sm:$0xff]   ;;  %1676 = vmatpush3.bf16.msra.mxu0 %v1775_v2  ;;  %v1780_v7 = vld [vmem:[#allocation7 + $0xb0] sm:$0xff]   ;;  %v1783_v10 = vld [vmem:[#allocation7 + $0x28] sm:$0xff]  }
  0x2b   :  { %1698 = vmatpush3.bf16.msra.mxu1 %v1776_v3  ;;  %1677 = vmatprep.subr.bf16.mxu0 %v1777_v4  ;;  %v1784_v11 = vld [vmem:[#allocation7 + $0xa8] sm:$0xff]   ;;  %v1785_v12 = vld [vmem:[#allocation7 + $0x60] sm:$0xff]   ;;  %v1789_v16 = vld [vmem:[#allocation7 + $0x58] sm:$0xff]  }
  0x2c   :  { %1699 = vmatprep.subr.bf16.mxu1 %v1778_v5  ;;  %v1786_v13 = vld [vmem:[#allocation7 + $0xe0] sm:$0xff]   ;;  %v1790_v17 = vld [vmem:[#allocation7 + $0xd8] sm:$0xff]   ;;  %v1793_v20 = vld [vmem:[#allocation7 + $0x50] sm:$0xff]  }
  0x2d   :  { %v1787_v14 = vld [vmem:[#allocation7 + $0x20] sm:$0xff]   ;;  %v1791_v18 = vld [vmem:[#allocation7 + $0x18] sm:$0xff]   ;;  %v1794_v21 = vld [vmem:[#allocation7 + $0xd0] sm:$0xff]  }
  0x2e   :  { %1678 = vmatpush3.bf16.msra.mxu0 %v1779_v6  ;;  %v1788_v15 = vld [vmem:[#allocation7 + $0xa0] sm:$0xff]   ;;  %v1792_v19 = vld [vmem:[#allocation7 + $0x98] sm:$0xff]   ;;  %v1795_v22 = vld [vmem:[#allocation7 + $0x10] sm:$0xff]  }
  0x2f   :  { %1700 = vmatpush3.bf16.msra.mxu1 %v1780_v7  ;;  %1679 = vmatprep.subr.bf16.mxu0 %v1781_v8  ;;  %v1796_v23 = vld [vmem:[#allocation7 + $0x90] sm:$0xff]   ;;  %v1797_v24 = vld [vmem:[#allocation7 + $0x48] sm:$0xff]   ;;  %v1801_v28 = vld [vmem:[#allocation7 + $0x40] sm:$0xff]  }
  0x30   :  { %1701 = vmatprep.subr.bf16.mxu1 %v1782_v9  ;;  %v1798_v25 = vld [vmem:[#allocation7 + $0xc8] sm:$0xff]   ;;  %v1802_v29 = vld [vmem:[#allocation7 + $0xc0] sm:$0xff]   ;;  %v2038_v33 = vld [vmem:[#allocation4 + $0x18] sm:$0xff] }
  0x31   :  { %v1799_v26 = vld [vmem:[#allocation7 + $0x8] sm:$0xff]   ;;  %v1803_v30 = vld [vmem:[#allocation7] sm:$0xff]   ;;  %v77_v36 = vpack.c.bf16 %v2038_v33, %v2038_v33  ;;  %v2048_v38 = vld [vmem:[#allocation4 + $0x10] sm:$0xff] }
  0x32   :  { %1680 = vmatpush3.bf16.msra.mxu0 %v1783_v10  ;;  %v1800_v27 = vld [vmem:[#allocation7 + $0x88] sm:$0xff]   ;;  %v1804_v31 = vld [vmem:[#allocation7 + $0x80] sm:$0xff]   ;;  %v76_v39 = vpack.c.bf16 %v2048_v38, %v2048_v38  ;;  %v1805_v40 = vld [vmem:[#allocation7 + $0x178] sm:$0xff]  }
  0x33   :  { %1702 = vmatpush3.bf16.msra.mxu1 %v1784_v11  ;;  %1681 = vmatprep.subr.bf16.mxu0 %v1785_v12  ;;  %v2036_v32 = vld [vmem:[#allocation4 + $0x8] sm:$0xff]  ;;  %v2040_v34 = vld [vmem:[#allocation4] sm:$0xff]  ;;  %v1806_v41 = vld [vmem:[#allocation7 + $0x1f8] sm:$0xff]  }
  0x34   :  { %1703 = vmatprep.subr.bf16.mxu1 %v1786_v13  ;;  %v75_v35 = vpack.c.bf16 %v2036_v32, %v2036_v32  ;;  %v74_v37 = vpack.c.bf16 %v2040_v34, %v2040_v34  ;;  %673 = vmatprep.mubr.bf16.mxu1 %v77_v36  ;;  %v1807_v42 = vld [vmem:[#allocation7 + $0x138] sm:$0xff]   ;;  %v1809_v44 = vld [vmem:[#allocation7 + $0x170] sm:$0xff]   ;;  %v1813_v48 = vld [vmem:[#allocation7 + $0x168] sm:$0xff]  }
  0x35   :  { %v1808_v43 = vld [vmem:[#allocation7 + $0x1b8] sm:$0xff]   ;;  %v1810_v45 = vld [vmem:[#allocation7 + $0x1f0] sm:$0xff]   ;;  %v1814_v49 = vld [vmem:[#allocation7 + $0x1e8] sm:$0xff]  }
  0x36   :  { %1682 = vmatpush3.bf16.msra.mxu0 %v1787_v14  ;;  %633 = vmatprep.mubr.bf16.mxu0 %v75_v35  ;;  %v1811_v46 = vld [vmem:[#allocation7 + $0x130] sm:$0xff]   ;;  %v1815_v50 = vld [vmem:[#allocation7 + $0x128] sm:$0xff]   ;;  %v1817_v52 = vld [vmem:[#allocation7 + $0x160] sm:$0xff]  }
  0x37   :  { %1704 = vmatpush3.bf16.msra.mxu1 %v1788_v15  ;;  %1683 = vmatprep.subr.bf16.mxu0 %v1789_v16  ;;  %v1812_v47 = vld [vmem:[#allocation7 + $0x1b0] sm:$0xff]   ;;  %v1816_v51 = vld [vmem:[#allocation7 + $0x1a8] sm:$0xff]   ;;  %v1818_v53 = vld [vmem:[#allocation7 + $0x1e0] sm:$0xff]  }
  0x38   :  { %1705 = vmatprep.subr.bf16.mxu1 %v1790_v17  ;;  %v1819_v54 = vld [vmem:[#allocation7 + $0x120] sm:$0xff]   ;;  %v1821_v56 = vld [vmem:[#allocation7 + $0x158] sm:$0xff]   ;;  %v1825_v60 = vld [vmem:[#allocation7 + $0x150] sm:$0xff]  }
  0x39   :  { %v1820_v55 = vld [vmem:[#allocation7 + $0x1a0] sm:$0xff]   ;;  %v1822_v57 = vld [vmem:[#allocation7 + $0x1d8] sm:$0xff]   ;;  %v1826_v61 = vld [vmem:[#allocation7 + $0x1d0] sm:$0xff]  }
  0x3a   :  { %1684 = vmatpush3.bf16.msra.mxu0 %v1791_v18  ;;  %v1823_v58 = vld [vmem:[#allocation7 + $0x118] sm:$0xff]   ;;  %v1827_v62 = vld [vmem:[#allocation7 + $0x110] sm:$0xff]   ;;  %v1829_v0 = vld [vmem:[#allocation7 + $0x148] sm:$0xff]  }
  0x3b   :  { %1706 = vmatpush3.bf16.msra.mxu1 %v1792_v19  ;;  %1685 = vmatprep.subr.bf16.mxu0 %v1793_v20  ;;  %v1824_v59 = vld [vmem:[#allocation7 + $0x198] sm:$0xff]   ;;  %v1828_v63 = vld [vmem:[#allocation7 + $0x190] sm:$0xff]   ;;  %v1830_v1 = vld [vmem:[#allocation7 + $0x1c8] sm:$0xff]  }
  0x3c   :  { %1707 = vmatprep.subr.bf16.mxu1 %v1794_v21  ;;  %v1831_v2 = vld [vmem:[#allocation7 + $0x108] sm:$0xff]   ;;  %v1833_v4 = vld [vmem:[#allocation7 + $0x140] sm:$0xff]   ;;  %v2054_v9 = vld [vmem:[#allocation4 + $0x38] sm:$0xff] }
  0x3d   :  { %v1832_v3 = vld [vmem:[#allocation7 + $0x188] sm:$0xff]   ;;  %v1834_v5 = vld [vmem:[#allocation7 + $0x1c0] sm:$0xff]   ;;  %v81_v11 = vpack.c.bf16 %v2054_v9, %v2054_v9  ;;  %v2062_v13 = vld [vmem:[#allocation4 + $0x30] sm:$0xff] }
  0x3e   :  { %1686 = vmatpush3.bf16.msra.mxu0 %v1795_v22  ;;  %v1835_v6 = vld [vmem:[#allocation7 + $0x100] sm:$0xff]   ;;  %v2052_v8 = vld [vmem:[#allocation4 + $0x28] sm:$0xff]  ;;  %v80_v15 = vpack.c.bf16 %v2062_v13, %v2062_v13 }
  0x3f   :  { %1708 = vmatpush3.bf16.msra.mxu1 %v1796_v23  ;;  %1687 = vmatprep.subr.bf16.mxu0 %v1797_v24  ;;  %v1836_v7 = vld [vmem:[#allocation7 + $0x180] sm:$0xff]   ;;  %v79_v10 = vpack.c.bf16 %v2052_v8, %v2052_v8  ;;  %v820_v18 = vld [vmem:[#allocation9 + $0x1c8] sm:$0xff] }
  0x40   :  { %1709 = vmatprep.subr.bf16.mxu1 %v1798_v25  ;;  %v2060_v12 = vld [vmem:[#allocation4 + $0x20] sm:$0xff]  ;;  %v824_v21 = vld [vmem:[#allocation9 + $0x1e8] sm:$0xff] }
  0x41   :  { %v78_v14 = vpack.c.bf16 %v2060_v12, %v2060_v12  ;;  %v819_v16 = vld [vmem:[#allocation9 + $0x1c0] sm:$0xff]  ;;  %v1657_v24 = vcombine.low %v820_v18, %v824_v21  ;;  %v1658_v25 = vcombine.high %v820_v18, %v824_v21  ;;  %v804_v35 = vld [vmem:[#allocation9 + $0x148] sm:$0xff] }
  0x42   :  { %1688 = vmatpush3.bf16.msra.mxu0 %v1799_v26  ;;  %v823_v17 = vld [vmem:[#allocation9 + $0x1e0] sm:$0xff]  ;;  %v808_v36 = vld [vmem:[#allocation9 + $0x168] sm:$0xff] }
  0x43   :  { %1710 = vmatpush3.bf16.msra.mxu1 %v1800_v27  ;;  %1689 = vmatprep.subr.bf16.mxu0 %v1801_v28  ;;  %v1655_v19 = vcombine.low %v819_v16, %v823_v17  ;;  %v1656_v20 = vcombine.high %v819_v16, %v823_v17  ;;  %v811_v22 = vld [vmem:[#allocation9 + $0x180] sm:$0xff]  ;;  %v812_v27 = vld [vmem:[#allocation9 + $0x188] sm:$0xff] }
  0x44   :  { %1711 = vmatprep.subr.bf16.mxu1 %v1802_v29  ;;  %v815_v23 = vld [vmem:[#allocation9 + $0x1a0] sm:$0xff]  ;;  %v816_v28 = vld [vmem:[#allocation9 + $0x1a8] sm:$0xff] }
  0x45   :  { %v1648_v26 = vcombine.high %v811_v22, %v815_v23  ;;  %v803_v29 = vld [vmem:[#allocation9 + $0x140] sm:$0xff]  ;;  %v764_v18 = vld [vmem:[#allocation9 + $0x8] sm:$0xff] }
  0x46   :  { %1690 = vmatpush3.bf16.msra.mxu0 %v1803_v30  ;;  %v1650_v30 = vcombine.high %v812_v27, %v816_v28  ;;  %v763_v16 = vld [vmem:[#allocation9] sm:$0xff] }
  0x47   :  { %1712 = vmatpush3.bf16.msra.mxu1 %v1804_v31  ;;  %1719 = vmatprep.subr.bf16.mxu0 %v1805_v40  ;;  %v807_v31 = vld [vmem:[#allocation9 + $0x160] sm:$0xff] }
  0x48   :  { %1741 = vmatprep.subr.bf16.mxu1 %v1806_v41  ;;  %v1640_v40 = vcombine.high %v803_v29, %v807_v31  ;;  %v1642_v41 = vcombine.high %v804_v35, %v808_v36  ;;  %v767_v17 = vld [vmem:[#allocation9 + $0x20] sm:$0xff] }
  0x49   :  { %634 = vmatmul.mubr.bf16.vlgmr.msra.gmra.mxu0 %v74_v37  ;;  %v1647_v37 = vcombine.low %v811_v22, %v815_v23  ;;  %v1599_v21 = vcombine.low %v763_v16, %v767_v17 }
  0x4a   :  { %674 = vmatmul.mubr.bf16.vlgmr.msra.gmra.mxu1 %v76_v39  ;;  %1720 = vmatpush3.bf16.msra.mxu0 %v1807_v42  ;;  %v1649_v39 = vcombine.low %v812_v27, %v816_v28  ;;  %v795_v42 = vld [vmem:[#allocation9 + $0x100] sm:$0xff] }
  0x4b   :  { %1742 = vmatpush3.bf16.msra.mxu1 %v1808_v43  ;;  %1721 = vmatprep.subr.bf16.mxu0 %v1809_v44  ;;  %v799_v43 = vld [vmem:[#allocation9 + $0x120] sm:$0xff]  ;;  %v796_v44 = vld [vmem:[#allocation9 + $0x108] sm:$0xff] }
  0x4c   :  { %1743 = vmatprep.subr.bf16.mxu1 %v1810_v45  ;;  %713 = vmatprep.mubr.bf16.mxu0 %v79_v10  ;;  %v800_v45 = vld [vmem:[#allocation9 + $0x128] sm:$0xff] }
  0x4d   :  { %753 = vmatprep.mubr.bf16.mxu1 %v81_v11  ;;  %v776_v10 = vld [vmem:[#allocation9 + $0x68] sm:$0xff] }
  0x4e   :  { %1722 = vmatpush3.bf16.msra.mxu0 %v1811_v46  ;;  %v1639_v46 = vcombine.low %v803_v29, %v807_v31  ;;  %v826_v29 = vld [vmem:[#allocation9 + $0x1f8] sm:$0xff] }
  0x4f   :  { %1744 = vmatpush3.bf16.msra.mxu1 %v1812_v47  ;;  %1723 = vmatprep.subr.bf16.mxu0 %v1813_v48  ;;  %v1641_v47 = vcombine.low %v804_v35, %v808_v36  ;;  %v1632_v48 = vcombine.high %v795_v42, %v799_v43 }
  0x50   :  { %1745 = vmatprep.subr.bf16.mxu1 %v1814_v49  ;;  %v1634_v49 = vcombine.high %v796_v44, %v800_v45 }
  0x52   :  { %1724 = vmatpush3.bf16.msra.mxu0 %v1815_v50  ;;  %v787_v50 = vld [vmem:[#allocation9 + $0xc0] sm:$0xff] }
  0x53   :  { %1746 = vmatpush3.bf16.msra.mxu1 %v1816_v51  ;;  %1725 = vmatprep.subr.bf16.mxu0 %v1817_v52  ;;  %v791_v51 = vld [vmem:[#allocation9 + $0xe0] sm:$0xff]  ;;  %v788_v52 = vld [vmem:[#allocation9 + $0xc8] sm:$0xff] }
  0x54   :  { %1747 = vmatprep.subr.bf16.mxu1 %v1818_v53  ;;  %v792_v53 = vld [vmem:[#allocation9 + $0xe8] sm:$0xff] }
  0x56   :  { %1726 = vmatpush3.bf16.msra.mxu0 %v1819_v54  ;;  %v1631_v54 = vcombine.low %v795_v42, %v799_v43 }
  0x57   :  { %1748 = vmatpush3.bf16.msra.mxu1 %v1820_v55  ;;  %1727 = vmatprep.subr.bf16.mxu0 %v1821_v56  ;;  %v1633_v55 = vcombine.low %v796_v44, %v800_v45  ;;  %v1624_v56 = vcombine.high %v787_v50, %v791_v51 }
  0x58   :  { %1749 = vmatprep.subr.bf16.mxu1 %v1822_v57  ;;  %v1626_v57 = vcombine.high %v788_v52, %v792_v53 }
  0x5a   :  { %1728 = vmatpush3.bf16.msra.mxu0 %v1823_v58  ;;  %v1623_v58 = vcombine.low %v787_v50, %v791_v51 }
  0x5b   :  { %1750 = vmatpush3.bf16.msra.mxu1 %v1824_v59  ;;  %1729 = vmatprep.subr.bf16.mxu0 %v1825_v60  ;;  %v1625_v59 = vcombine.low %v788_v52, %v792_v53  ;;  %v779_v60 = vld [vmem:[#allocation9 + $0x80] sm:$0xff] }
  0x5c   :  { %1751 = vmatprep.subr.bf16.mxu1 %v1826_v61  ;;  %v783_v61 = vld [vmem:[#allocation9 + $0xa0] sm:$0xff] }
  0x5e   :  { %1730 = vmatpush3.bf16.msra.mxu0 %v1827_v62  ;;  %v780_v62 = vld [vmem:[#allocation9 + $0x88] sm:$0xff] }
  0x5f   :  { %1752 = vmatpush3.bf16.msra.mxu1 %v1828_v63  ;;  %1731 = vmatprep.subr.bf16.mxu0 %v1829_v0  ;;  %v1616_v63 = vcombine.high %v779_v60, %v783_v61  ;;  %v784_v0 = vld [vmem:[#allocation9 + $0xa8] sm:$0xff] }
  0x60   :  { %1753 = vmatprep.subr.bf16.mxu1 %v1830_v1  ;;  %v1615_v1 = vcombine.low %v779_v60, %v783_v61 }
  0x62   :  { %1732 = vmatpush3.bf16.msra.mxu0 %v1831_v2  ;;  %v1617_v2 = vcombine.low %v780_v62, %v784_v0 }
  0x63   :  { %1754 = vmatpush3.bf16.msra.mxu1 %v1832_v3  ;;  %1733 = vmatprep.subr.bf16.mxu0 %v1833_v4  ;;  %v1618_v3 = vcombine.high %v780_v62, %v784_v0  ;;  %v771_v4 = vld [vmem:[#allocation9 + $0x40] sm:$0xff]  ;;  %v813_v62 = vld [vmem:[#allocation9 + $0x190] sm:$0xff]  ;;  %v814_v0 = vld [vmem:[#allocation9 + $0x198] sm:$0xff] }
  0x64   :  { %1755 = vmatprep.subr.bf16.mxu1 %v1834_v5  ;;  %v775_v5 = vld [vmem:[#allocation9 + $0x60] sm:$0xff] }
  0x65   :  { %v1607_v11 = vcombine.low %v771_v4, %v775_v5 }
  0x66   :  { %1734 = vmatpush3.bf16.msra.mxu0 %v1835_v6  ;;  %v772_v6 = vld [vmem:[#allocation9 + $0x48] sm:$0xff] }
  0x67   :  { %1756 = vmatpush3.bf16.msra.mxu1 %v1836_v7  ;;  %1189 = vmatprep.subr.bf16.mxu0 %v1656_v20  ;;  %v1608_v7 = vcombine.high %v771_v4, %v775_v5  ;;  %v768_v20 = vld [vmem:[#allocation9 + $0x28] sm:$0xff] }
  0x68   :  { %1230 = vmatprep.subr.bf16.mxu1 %v1658_v25  ;;  %v1601_v22 = vcombine.low %v764_v18, %v768_v20  ;;  %v1602_v23 = vcombine.high %v764_v18, %v768_v20  ;;  %v825_v25 = vld [vmem:[#allocation9 + $0x1f0] sm:$0xff]  ;;  %v798_v20 = vld [vmem:[#allocation9 + $0x118] sm:$0xff] }
  0x69   :  { %714 = vmatmul.mubr.bf16.vlgmr.msra.gmra.mxu0 %v78_v14  ;;  %v1609_v14 = vcombine.low %v772_v6, %v776_v10  ;;  %v797_v18 = vld [vmem:[#allocation9 + $0x110] sm:$0xff] }
  0x6a   :  { %754 = vmatmul.mubr.bf16.vlgmr.msra.gmra.mxu1 %v80_v15  ;;  %1190 = vmatpush1.bf16.msra.mxu0 %v1655_v19  ;;  %v1610_v15 = vcombine.high %v772_v6, %v776_v10  ;;  %v1600_v19 = vcombine.high %v763_v16, %v767_v17  ;;  %v805_v6 = vld [vmem:[#allocation9 + $0x150] sm:$0xff]  ;;  %v806_v10 = vld [vmem:[#allocation9 + $0x158] sm:$0xff] }
  0x6b   :  { %1231 = vmatpush1.bf16.msra.mxu1 %v1657_v24  ;;  %1191 = vmatprep.subr.bf16.mxu0 %v1648_v26  ;;  %v821_v24 = vld [vmem:[#allocation9 + $0x1d0] sm:$0xff]  ;;  %v822_v26 = vld [vmem:[#allocation9 + $0x1d8] sm:$0xff] }
  0x6c   :  { %1232 = vmatprep.subr.bf16.mxu1 %v1650_v30  ;;  %v1659_v27 = vcombine.low %v821_v24, %v825_v25  ;;  %v1660_v28 = vcombine.high %v821_v24, %v825_v25  ;;  %v1984_v30 = vmov 0   ;;  %v1661_v31 = vcombine.low %v822_v26, %v826_v29 }
  0x6d   :  { %1221 = vmatprep.mubr.bf16.mxu0 %v1984_v30  ;;  %1262 = vmatprep.mubr.bf16.mxu1 %v1984_v30  ;;  %v1662_v35 = vcombine.high %v822_v26, %v826_v29  ;;  %v789_v26 = vld [vmem:[#allocation9 + $0xd0] sm:$0xff]  ;;  %v794_v29 = vld [vmem:[#allocation9 + $0xf8] sm:$0xff] }
  0x6e   :  { %1192 = vmatpush1.bf16.msra.mxu0 %v1647_v37 }
  0x6f   :  { %1233 = vmatpush1.bf16.msra.mxu1 %v1649_v39  ;;  %1193 = vmatprep.subr.bf16.mxu0 %v1640_v40 }
  0x70   :  { %1234 = vmatprep.subr.bf16.mxu1 %v1642_v41 }
  0x72   :  { %1194 = vmatpush1.bf16.msra.mxu0 %v1639_v46  ;;  %v1534_v46 = vld [vmem:[%s2165_s3] ss:$0 sm:$0xff] }
  0x73   :  { %1235 = vmatpush1.bf16.msra.mxu1 %v1641_v47  ;;  %1195 = vmatprep.subr.bf16.mxu0 %v1632_v48 }
  0x74   :  { %1236 = vmatprep.subr.bf16.mxu1 %v1634_v49 }
  0x76   :  { %1196 = vmatpush1.bf16.msra.mxu0 %v1631_v54 }
  0x77   :  { %1237 = vmatpush1.bf16.msra.mxu1 %v1633_v55  ;;  %1197 = vmatprep.subr.bf16.mxu0 %v1624_v56 }
  0x78   :  { %1238 = vmatprep.subr.bf16.mxu1 %v1626_v57 }
  0x7a   :  { %1198 = vmatpush1.bf16.msra.mxu0 %v1623_v58 }
  0x7b   :  { %1239 = vmatpush1.bf16.msra.mxu1 %v1625_v59  ;;  %1199 = vmatprep.subr.bf16.mxu0 %v1616_v63  ;;  %v817_v63 = vld [vmem:[#allocation9 + $0x1b0] sm:$0xff] }
  0x7c   :  { %1240 = vmatprep.subr.bf16.mxu1 %v1618_v3  ;;  %v1652_v4 = vcombine.high %v813_v62, %v817_v63 }
  0x7e   :  { %1200 = vmatpush1.bf16.msra.mxu0 %v1615_v1  ;;  %v818_v1 = vld [vmem:[#allocation9 + $0x1b8] sm:$0xff] }
  0x7f   :  { %1241 = vmatpush1.bf16.msra.mxu1 %v1617_v2  ;;  %1201 = vmatprep.subr.bf16.mxu0 %v1608_v7  ;;  %v1654_v5 = vcombine.high %v814_v0, %v818_v1  ;;  %v809_v7 = vld [vmem:[#allocation9 + $0x170] sm:$0xff] }
  0x80   :  { %1242 = vmatprep.subr.bf16.mxu1 %v1610_v15  ;;  %v1653_v15 = vcombine.low %v814_v0, %v818_v1  ;;  %v1644_v16 = vcombine.high %v805_v6, %v809_v7  ;;  %v829_v0 = vlaneseq }
  0x82   :  { %1202 = vmatpush1.bf16.msra.mxu0 %v1607_v11  ;;  %v810_v11 = vld [vmem:[#allocation9 + $0x178] sm:$0xff]  ;;  %v2077_v1 = vshrl.u32 %v829_v0, 7 }
  0x83   :  { %1243 = vmatpush1.bf16.msra.mxu1 %v1609_v14  ;;  %1203 = vmatprep.subr.bf16.mxu0 %v1600_v19  ;;  %v1651_v14 = vcombine.low %v813_v62, %v817_v63  ;;  %v1646_v17 = vcombine.high %v806_v10, %v810_v11  ;;  %v801_v19 = vld [vmem:[#allocation9 + $0x130] sm:$0xff] }
  0x84   :  { %1244 = vmatprep.subr.bf16.mxu1 %v1602_v23  ;;  %v1645_v23 = vcombine.low %v806_v10, %v810_v11  ;;  %v1636_v24 = vcombine.high %v797_v18, %v801_v19 }
  0x86   :  { %1204 = vmatpush1.bf16.msra.mxu0 %v1599_v21  ;;  %v802_v21 = vld [vmem:[#allocation9 + $0x138] sm:$0xff] }
  0x87   :  { %1245 = vmatpush1.bf16.msra.mxu1 %v1601_v22  ;;  %1271 = vmatprep.subr.bf16.mxu0 %v1660_v28  ;;  %v1643_v22 = vcombine.low %v805_v6, %v809_v7  ;;  %v1638_v25 = vcombine.high %v798_v20, %v802_v21  ;;  %v790_v28 = vld [vmem:[#allocation9 + $0xd8] sm:$0xff]  ;;  %v835_v6 = vsub.s32 1, %v2077_v1  ;;  %v843_v7 = vsub.s32 3, %v2077_v1 }
  0x88   :  { %1312 = vmatprep.subr.bf16.mxu1 %v1662_v35  ;;  %v1637_v35 = vcombine.low %v798_v20, %v802_v21 }
 0x109   :  { %v1691_v36 = vpop.f32.mrf.mxu0 }
 0x10a   :  { %v1713_v37 = vpop.f32.mrf.mxu1 }
 0x10b   :  { %v1692_v39 = vpop.f32.mrf.mxu0 }
 0x10c   :  { %v1714_v40 = vpop.f32.mrf.mxu1  ;;  %v1693_v45 = vadd.f32 %v1692_v39, %v1691_v36  ;;  %v785_v39 = vld [vmem:[#allocation9 + $0xb0] sm:$0xff] }
 0x10d   :  { %v1694_v41 = vpop.f32.mrf.mxu0  ;;  %v1715_v48 = vadd.f32 %v1714_v40, %v1713_v37  ;;  %v781_v37 = vld [vmem:[#allocation9 + $0x90] sm:$0xff]  ;;  %v782_v40 = vld [vmem:[#allocation9 + $0x98] sm:$0xff] }
 0x10e   :  { %v1716_v42 = vpop.f32.mrf.mxu1  ;;  %v636_v47 = vadd.f32 %v1693_v45, %v1534_v46  ;;  %v786_v41 = vld [vmem:[#allocation9 + $0xb8] sm:$0xff]  ;;  %v773_v46 = vld [vmem:[#allocation9 + $0x50] sm:$0xff] }
 0x10f   :  { %v1695_v43 = vpop.f32.mrf.mxu0  ;;  %v1622_v45 = vcombine.high %v782_v40, %v786_v41 }
 0x110   :  { %v1717_v44 = vpop.f32.mrf.mxu1  ;;  %v676_v52 = vadd.f32 %v1715_v48, %v636_v47  ;;  %v1629_v43 = vcombine.low %v790_v28, %v794_v29  ;;  %v777_v47 = vld [vmem:[#allocation9 + $0x70] sm:$0xff]  ;;  %v774_v48 = vld [vmem:[#allocation9 + $0x58] sm:$0xff] }
 0x111   :  { %v1620_v44 = vcombine.high %v781_v37, %v785_v39 }
 0x129   :  { %v1735_v49 = vpop.f32.mrf.mxu0 }
 0x12a   :  { %v1757_v50 = vpop.f32.mrf.mxu1 }
 0x12b   :  { %v1736_v51 = vpop.f32.mrf.mxu0 }
 0x12c   :  { %v1737_v53 = vadd.f32 %v1736_v51, %v1735_v49  ;;  %v1758_v54 = vpop.f32.mrf.mxu1  ;;  %v778_v49 = vld [vmem:[#allocation9 + $0x78] sm:$0xff]  ;;  %v1621_v51 = vcombine.low %v782_v40, %v786_v41 }
 0x12d   :  { %v1738_v55 = vpop.f32.mrf.mxu0  ;;  %v1759_v57 = vadd.f32 %v1758_v54, %v1757_v50  ;;  %v1619_v50 = vcombine.low %v781_v37, %v785_v39  ;;  %v765_v54 = vld [vmem:[#allocation9 + $0x10] sm:$0xff] }
 0x12e   :  { %v716_v56 = vadd.f32 %v1737_v53, %v676_v52  ;;  %v1760_v58 = vpop.f32.mrf.mxu1  ;;  %v1612_v52 = vcombine.high %v773_v46, %v777_v47  ;;  %v1614_v53 = vcombine.high %v774_v48, %v778_v49  ;;  %v769_v55 = vld [vmem:[#allocation9 + $0x30] sm:$0xff] }
 0x12f   :  { %v1739_v59 = vpop.f32.mrf.mxu0  ;;  %v1611_v58 = vcombine.low %v773_v46, %v777_v47  ;;  %v1603_v62 = vcombine.low %v765_v54, %v769_v55  ;;  %v847_v47 = vsub.s32 4, %v2077_v1 }
 0x130   :  { %v756_v60 = vadd.f32 %v1759_v57, %v716_v56  ;;  %v1761_v61 = vpop.f32.mrf.mxu1  ;;  %v766_v56 = vld [vmem:[#allocation9 + $0x18] sm:$0xff]  ;;  %v1613_v59 = vcombine.low %v774_v48, %v778_v49  ;;  %v855_v48 = vsub.s32 6, %v2077_v1  ;;  %v851_v49 = vsub.s32 5, %v2077_v1 }
 0x131   :  { %v770_v57 = vld [vmem:[#allocation9 + $0x38] sm:$0xff] }
 0x132   :  { %v761_v2 = vmax.f32 %v756_v60, 0.0  ;;  %v1604_v60 = vcombine.high %v765_v54, %v769_v55  ;;  %v1606_v61 = vcombine.high %v766_v56, %v770_v57  ;;  %v1605_v63 = vcombine.low %v766_v56, %v770_v57 }
 0x134   :  { %v2071_v3 = vpack.c.bf16 %v761_v2, %v761_v2  ;;  %v831_v2 = vsub.s32 0, %v2077_v1 }
 0x136   :  { %1222 = vmatmul.mubr.bf16.vlgmr.msra.gmra.mxu0 %v2071_v3  ;;  %1263 = vmatmul.mubr.bf16.vlgmr.msra.gmra.mxu1 %v2071_v3 }
 0x137   :  { %1272 = vmatpush1.bf16.msra.mxu0 %v1659_v27  ;;  %1313 = vmatpush1.bf16.msra.mxu1 %v1661_v31  ;;  %v793_v27 = vld [vmem:[#allocation9 + $0xf0] sm:$0xff]  ;;  %v1635_v31 = vcombine.low %v797_v18, %v801_v19 }
 0x138   :  { %1273 = vmatprep.subr.bf16.mxu0 %v1652_v4  ;;  %1314 = vmatprep.subr.bf16.mxu1 %v1654_v5  ;;  %v1628_v36 = vcombine.high %v789_v26, %v793_v27  ;;  %v1627_v42 = vcombine.low %v789_v26, %v793_v27  ;;  %v839_v4 = vsub.s32 2, %v2077_v1  ;;  %v827_v5 = vld [vmem:[%s2167_s5] sm:$0xff] }
 0x139   :  { %1303 = vmatprep.mubr.bf16.mxu0 %v1984_v30  ;;  %1344 = vmatprep.mubr.bf16.mxu1 %v1984_v30  ;;  %v1630_v30 = vcombine.high %v790_v28, %v794_v29  ;;  %v832_v10 = vrot.slane %v827_v5, %v831_v2 }
 0x13a   :  { %v840_v11 = vrot.slane %v827_v5, %v839_v4 }
 0x13b   :  { %1274 = vmatpush1.bf16.msra.mxu0 %v1651_v14  ;;  %1315 = vmatpush1.bf16.msra.mxu1 %v1653_v15  ;;  %v836_v14 = vrot.slane %v827_v5, %v835_v6  ;;  %v844_v15 = vrot.slane %v827_v5, %v843_v7 }
 0x13c   :  { %1275 = vmatprep.subr.bf16.mxu0 %v1644_v16  ;;  %1316 = vmatprep.subr.bf16.mxu1 %v1646_v17 }
 0x13f   :  { %1276 = vmatpush1.bf16.msra.mxu0 %v1643_v22  ;;  %1317 = vmatpush1.bf16.msra.mxu1 %v1645_v23 }
 0x140   :  { %1277 = vmatprep.subr.bf16.mxu0 %v1636_v24  ;;  %1318 = vmatprep.subr.bf16.mxu1 %v1638_v25 }
 0x143   :  { %1278 = vmatpush1.bf16.msra.mxu0 %v1635_v31  ;;  %1319 = vmatpush1.bf16.msra.mxu1 %v1637_v35 }
 0x144   :  { %1279 = vmatprep.subr.bf16.mxu0 %v1628_v36  ;;  %1320 = vmatprep.subr.bf16.mxu1 %v1630_v30 }
 0x147   :  { %1280 = vmatpush1.bf16.msra.mxu0 %v1627_v42  ;;  %1321 = vmatpush1.bf16.msra.mxu1 %v1629_v43 }
 0x148   :  { %1281 = vmatprep.subr.bf16.mxu0 %v1620_v44  ;;  %1322 = vmatprep.subr.bf16.mxu1 %v1622_v45 }
 0x14b   :  { %1282 = vmatpush1.bf16.msra.mxu0 %v1619_v50  ;;  %1323 = vmatpush1.bf16.msra.mxu1 %v1621_v51  ;;  %v859_v50 = vsub.s32 7, %v2077_v1  ;;  %v848_v51 = vrot.slane %v827_v5, %v847_v47 }
 0x14c   :  { %1283 = vmatprep.subr.bf16.mxu0 %v1612_v52  ;;  %1324 = vmatprep.subr.bf16.mxu1 %v1614_v53  ;;  %v856_v52 = vrot.slane %v827_v5, %v855_v48  ;;  %v852_v53 = vrot.slane %v827_v5, %v851_v49 }
 0x14d   :  { %v860_v54 = vrot.slane %v827_v5, %v859_v50 }
 0x14f   :  { %1284 = vmatpush1.bf16.msra.mxu0 %v1611_v58  ;;  %1325 = vmatpush1.bf16.msra.mxu1 %v1613_v59 }
 0x150   :  { %1285 = vmatprep.subr.bf16.mxu0 %v1604_v60  ;;  %1326 = vmatprep.subr.bf16.mxu1 %v1606_v61 }
 0x153   :  { %1286 = vmatpush1.bf16.msra.mxu0 %v1603_v62  ;;  %1327 = vmatpush1.bf16.msra.mxu1 %v1605_v63 }
 0x156   :  { %1304 = vmatmul.mubr.bf16.vlgmr.msra.gmra.mxu0 %v2071_v3  ;;  %1345 = vmatmul.mubr.bf16.vlgmr.msra.gmra.mxu1 %v2071_v3 }
 0x1f6   :  { %v1223_v3 = vpop.f32.mrf.mxu0  ;;  %v1264_v16 = vpop.f32.mrf.mxu1 }
 0x1f7   :  { %v1224_v17 = vadd.f32 %v1223_v3, %v832_v10  ;;  %v1265_v18 = vadd.f32 %v1264_v16, %v840_v11 }
 0x1f8   :  { %v1225_v19 = vpop.f32.mrf.mxu0  ;;  %v1266_v20 = vpop.f32.mrf.mxu1 }
 0x1f9   :  { %v1353_v21 = vsub.f32 0.0, %v1224_v17  ;;  %v1355_v22 = vsub.f32 0.0, %v1265_v18  ;;  %v1226_v23 = vadd.f32 %v1225_v19, %v836_v14  ;;  %v1267_v24 = vadd.f32 %v1266_v20, %v844_v15 }
 0x1fa   :  { %v1227_v25 = vpop.f32.mrf.mxu0  ;;  %v1268_v26 = vpop.f32.mrf.mxu1 }
 0x1fb   :  { %v1361_v27 = vmul.f32 1.442695, %v1353_v21  ;;  %v1365_v28 = vmul.f32 1.442695, %v1355_v22  ;;  %v1354_v29 = vsub.f32 0.0, %v1226_v23  ;;  %v1356_v31 = vsub.f32 0.0, %v1267_v24 }
 0x1fc   :  { %v1228_v35 = vpop.f32.mrf.mxu0  ;;  %v1269_v36 = vpop.f32.mrf.mxu1 }
 0x1fd   :  { %1837 = vpow2.f32 %v1361_v27  ;;  %v1363_v30 = vmul.f32 1.442695, %v1354_v29  ;;  %v1367_v37 = vmul.f32 1.442695, %v1356_v31 }
 0x1fe   :  { %1839 = vpow2.f32 %v1365_v28 }
 0x1ff   :  { %1841 = vpow2.f32 %v1363_v30 }
 0x200   :  { %1843 = vpow2.f32 %v1367_v37 }
 0x20a   :  { %v1838_v39 = vpop.eup %1837 }
 0x20b   :  { %v1840_v40 = vpop.eup %1839  ;;  %v1377_v41 = vadd.f32 1.0, %v1838_v39 }
 0x20c   :  { %v1842_v42 = vpop.eup %1841  ;;  %v1379_v43 = vadd.f32 1.0, %v1840_v40 }
 0x20d   :  { %v1844_v44 = vpop.eup %1843  ;;  %1845 = vrcp.f32 %v1377_v41  ;;  %v1378_v45 = vadd.f32 1.0, %v1842_v42 }
 0x20e   :  { %1847 = vrcp.f32 %v1379_v43  ;;  %v1380_v46 = vadd.f32 1.0, %v1844_v44 }
 0x20f   :  { %1849 = vrcp.f32 %v1378_v45 }
 0x210   :  { %1851 = vrcp.f32 %v1380_v46 }
 0x216   :  { %v1305_v55 = vpop.f32.mrf.mxu0  ;;  %v1346_v56 = vpop.f32.mrf.mxu1 }
 0x217   :  { %v1306_v57 = vadd.f32 %v1305_v55, %v848_v51  ;;  %v1347_v58 = vadd.f32 %v1346_v56, %v856_v52 }
 0x218   :  { %v1307_v59 = vpop.f32.mrf.mxu0  ;;  %v1348_v60 = vpop.f32.mrf.mxu1 }
 0x219   :  { %v1357_v61 = vsub.f32 0.0, %v1306_v57  ;;  %v1359_v62 = vsub.f32 0.0, %v1347_v58  ;;  %v1308_v63 = vadd.f32 %v1307_v59, %v852_v53  ;;  %v1349_v0 = vadd.f32 %v1348_v60, %v860_v54 }
 0x21a   :  { %v2090_v2 = vpop.eup %1845  ;;  %v1309_v4 = vpop.f32.mrf.mxu0 }
 0x21b   :  { %v1350_v6 = vpop.f32.mrf.mxu1  ;;  %v2092_v7 = vpop.eup %1847  ;;  %v1369_v10 = vmul.f32 1.442695, %v1357_v61  ;;  %v1373_v11 = vmul.f32 1.442695, %v1359_v62  ;;  %v1358_v14 = vsub.f32 0.0, %v1308_v63  ;;  %v1360_v5 = vsub.f32 0.0, %v1349_v0 }
 0x21c   :  { %v2094_v15 = vpop.eup %1849  ;;  %v1310_v3 = vpop.f32.mrf.mxu0 }
 0x21d   :  { %v1351_v16 = vpop.f32.mrf.mxu1  ;;  %v2096_v17 = vpop.eup %1851  ;;  %v1671_v18 = vpack.c.bf16 %v2094_v15, %v2090_v2  ;;  %1853 = vpow2.f32 %v1369_v10  ;;  %v1371_v19 = vmul.f32 1.442695, %v1358_v14  ;;  %v1375_v20 = vmul.f32 1.442695, %v1360_v5 }
 0x21e   :  { %v1672_v21 = vpack.c.bf16 %v2096_v17, %v2092_v7  ;;  %1855 = vpow2.f32 %v1373_v11 }
 0x21f   :  { %1425 = vst [vmem:[#allocation10] sm:$0xff] %v1671_v18  ;;  %1857 = vpow2.f32 %v1371_v19 }
 0x220   :  { %1426 = vst [vmem:[#allocation10 + $0x8] sm:$0xff] %v1672_v21  ;;  %1859 = vpow2.f32 %v1375_v20 }
 0x22a   :  { %v1854_v22 = vpop.eup %1853 }
 0x22b   :  { %v1856_v23 = vpop.eup %1855  ;;  %v1381_v24 = vadd.f32 1.0, %v1854_v22 }
 0x22c   :  { %v1858_v25 = vpop.eup %1857  ;;  %v1383_v26 = vadd.f32 1.0, %v1856_v23 }
 0x22d   :  { %v1860_v27 = vpop.eup %1859  ;;  %1861 = vrcp.f32 %v1381_v24  ;;  %v1382_v28 = vadd.f32 1.0, %v1858_v25 }
 0x22e   :  { %1863 = vrcp.f32 %v1383_v26  ;;  %v1384_v29 = vadd.f32 1.0, %v1860_v27 }
 0x22f   :  { %1865 = vrcp.f32 %v1382_v28 }
 0x230   :  { %1867 = vrcp.f32 %v1384_v29 }
 0x23a   :  { %v1862_v31 = vpop.eup %1861 }
 0x23b   :  { %v1864_v35 = vpop.eup %1863 }
 0x23c   :  { %v1866_v36 = vpop.eup %1865  ;;  %1435 = sbr.rel (%p1668_p1) target bundleno = 596 (0x254), region = 37 }
 0x23d   :  { %v1868_v30 = vpop.eup %1867  ;;  %v1673_v37 = vpack.c.bf16 %v1866_v36, %v1862_v31 }
 0x23e   :  { %v1674_v39 = vpack.c.bf16 %v1868_v30, %v1864_v35 }
 0x23f   :  { %1427 = vst [vmem:[#allocation10 + $0x10] sm:$0xff] %v1673_v37 }
 0x240   :  { %1428 = vst [vmem:[#allocation10 + $0x18] sm:$0xff] %v1674_v39 }
 0x241   :  { %v1436_v40 = vsub.f32 %v2040_v34, %v2090_v2  ;;  %v1437_v41 = vsub.f32 %v2036_v32, %v2094_v15  ;;  %v1438_v42 = vsub.f32 %v2048_v38, %v2092_v7  ;;  %v1439_v43 = vsub.f32 %v2038_v33, %v2096_v17 }
 0x242   :  { %v1440_v44 = vsub.f32 %v2060_v12, %v1862_v31  ;;  %v1441_v48 = vsub.f32 %v2052_v8, %v1866_v36  ;;  %v1442_v51 = vsub.f32 %v2062_v13, %v1864_v35  ;;  %v1443_v54 = vsub.f32 %v2054_v9, %v1868_v30 }
 0x243   :  { %v1444_v45 = vand.u32 2147483647, %v1436_v40  ;;  %v1445_v46 = vand.u32 2147483647, %v1437_v41  ;;  %v1446_v47 = vand.u32 2147483647, %v1438_v42 }
 0x244   :  { %v1447_v49 = vand.u32 2147483647, %v1439_v43  ;;  %v1448_v52 = vand.u32 2147483647, %v1440_v44  ;;  %v1449_v55 = vand.u32 2147483647, %v1441_v48 }
 0x245   :  { %v1452_v50 = vadd.f32 %v1445_v46, %v1444_v45  ;;  %v1450_v57 = vand.u32 2147483647, %v1442_v51  ;;  %v1451_v59 = vand.u32 2147483647, %v1443_v54 }
 0x247   :  { %v1453_v53 = vadd.f32 %v1452_v50, %v1446_v47 }
 0x249   :  { %v1454_v56 = vadd.f32 %v1453_v53, %v1447_v49 }
 0x24b   :  { %v1455_v58 = vadd.f32 %v1454_v56, %v1448_v52 }
 0x24d   :  { %v1456_v60 = vadd.f32 %v1455_v58, %v1449_v55 }
 0x24f   :  { %v1457_v61 = vadd.f32 %v1456_v60, %v1450_v57 }
 0x251   :  { %v1458_v62 = vadd.f32 %v1457_v61, %v1451_v59 }
 0x253   :  { %1459 = vst [vmem:[#allocation11] sm:$0xff] %v1458_v62 }
 0x254 PF:  { %p1670_p2 = scmp.ge.s32.totalorder %s2162_s0, 8 }
 0x256   :  { %1463 = sbr.rel (%p1670_p2) target bundleno = 623 (0x26f), region = 41 }
 0x25b   :  { %v1468_v63 = vstv %s2162_s0  ;;  %v1470_v0 = vsub.f32 %v2040_v34, %v2090_v2  ;;  %v1471_v4 = vsub.f32 %v2036_v32, %v2094_v15  ;;  %v1472_v6 = vsub.f32 %v2048_v38, %v2092_v7 }
 0x25c   :  { %v1473_v10 = vsub.f32 %v2038_v33, %v2096_v17  ;;  %vm2132_vm0 = vcmp.lt.s32.totalorder %v2077_v1, %v1468_v63  ;;  %v1474_v14 = vsub.f32 %v2060_v12, %v1862_v31  ;;  %v1475_v34 = vsub.f32 %v2052_v8, %v1866_v36 }
 0x25d   :  { %v1478_v5 = vand.u32 2147483647, %v1470_v0  ;;  %v1479_v3 = vand.u32 2147483647, %v1471_v4  ;;  %v1480_v16 = vand.u32 2147483647, %v1472_v6  ;;  %v1476_v33 = vsub.f32 %v2062_v13, %v1864_v35 }
 0x25e   :  { %v1481_v2 = vand.u32 2147483647, %v1473_v10  ;;  %v1482_v1 = vand.u32 2147483647, %v1474_v14  ;;  %v1477_v12 = vsub.f32 %v2054_v9, %v1868_v30  ;;  %v1483_v17 = vand.u32 2147483647, %v1475_v34 }
 0x25f   :  { %v1488_v32 = vsel %vm2132_vm0, %v1478_v5, 0.0  ;;  %v1489_v38 = vsel %vm2132_vm0, %v1479_v3, 0.0  ;;  %v1490_v7 = vsel %vm2132_vm0, %v1480_v16, 0.0  ;;  %v1484_v19 = vand.u32 2147483647, %v1476_v33 }
 0x260   :  { %v1496_v15 = vadd.f32 %v1489_v38, %v1488_v32  ;;  %v1491_v8 = vsel %vm2132_vm0, %v1481_v2, 0.0  ;;  %v1492_v20 = vsel %vm2132_vm0, %v1482_v1, 0.0  ;;  %v1485_v22 = vand.u32 2147483647, %v1477_v12 }
 0x261   :  { %v1493_v13 = vsel %vm2132_vm0, %v1483_v17, 0.0  ;;  %v1494_v24 = vsel %vm2132_vm0, %v1484_v19, 0.0 }
 0x262   :  { %v1497_v18 = vadd.f32 %v1496_v15, %v1490_v7  ;;  %v1495_v9 = vsel %vm2132_vm0, %v1485_v22, 0.0 }
 0x264   :  { %v1498_v21 = vadd.f32 %v1497_v18, %v1491_v8 }
 0x266   :  { %v1499_v23 = vadd.f32 %v1498_v21, %v1492_v20 }
 0x268   :  { %v1500_v25 = vadd.f32 %v1499_v23, %v1493_v13 }
 0x26a   :  { %v1501_v26 = vadd.f32 %v1500_v25, %v1494_v24 }
 0x26c   :  { %v1502_v27 = vadd.f32 %v1501_v26, %v1495_v9 }
 0x26e   :  { %1503 = vst [vmem:[#allocation11] sm:$0xff] %v1502_v27 }
 0x26f PF:  { %s1985_s0 = smov [#allocation10]   ;;  %s1986_s26 = smov [#allocation11]  }
 0x270   :  { %s1510_s25 = sshll.u32 %s1985_s0, 4  ;;  %s1520_s27 = sshll.u32 %s1986_s26, 4  ;;  %s1511_s25 = int_to_ptr.vmem [resolvable:$true] %s1510_s25  ;;  %s1521_s27 = int_to_ptr.vmem [resolvable:$true] %s1520_s27 }
 0x271   :  { %s1929_s28 = scalar_lea.vmem %s1511_s25, 512  ;;  %p1934_p4 = scmp.lt.s32.totalorder %s1511_s25, %s1511_s25 }
 0x272   :  { %p1930_p3 = scmp.ne.s32.totalorder %s1511_s25, %s1929_s28  ;;  %p1935_p5 = scmp.lt.s32.totalorder %s1929_s28, %s1929_s28 }
 0x274   :  { %p1936_p6 = por %p1935_p5, %p1934_p4 }
 0x276   :  { %p1937_p7 = pnand %p1936_p6, %p1930_p3 }
 0x278   :  { %1940 = shalt.err (!%p1937_p7)
}
 0x279   :  { %1513 = dma.vmem_to_hbm [thread:$0]  %s1511_s25, 512, %s2168_s6, [#allocation6]  }
 0x27a   :  { %s1949_s8 = scalar_lea.vmem %s1521_s27, 128  ;;  %p1954_p9 = scmp.lt.s32.totalorder %s1521_s27, %s1521_s27 }
 0x27b   :  { %p1950_p8 = scmp.ne.s32.totalorder %s1521_s27, %s1949_s8  ;;  %p1955_p10 = scmp.lt.s32.totalorder %s1949_s8, %s1949_s8 }
 0x27d   :  { %p1956_p11 = por %p1955_p10, %p1954_p9 }
 0x27f   :  { %p1957_p12 = pnand %p1956_p11, %p1950_p8 }
 0x281   :  { %1960 = shalt.err (!%p1957_p12)
}
 0x282   :  { %1523 = dma.vmem_to_hbm [thread:$0]  %s1521_s27, 128, %s2169_s7, [#allocation12]  }
 0x283   :  { %1973 = dma.done.wait [#allocation6], 512  }
 0x284   :  { %1974 = vsyncadd [#allocation6], 4294966784 }
 0x285   :  { %1975 = dma.done.wait [#allocation12], 128  }
 0x286   :  { %1976 = vsyncadd [#allocation12], 4294967168 }
 0x287   :  { %1530 = vsyncpa [#allocation5], 1 }
 0x288   :  { %1531 = vsyncpa [#allocation8], 1 }
 0x289   :  { %1532 = vsyncpa [#allocation6], 1 }
 0x28a   :  { %1533 = vsyncpa [#allocation12], 1 }

</bundles_post_ra>
